<compile_context>
chip_gen: v5e
topology: v5e:2x2
jax: 0.10.0
libtpu: 0.0.40
codegen_flags: <defaults>
</compile_context>

<pallas_src>
import functools
import math
import numpy as np
import jax
import jax.numpy as jnp
from jax import lax
from jax.experimental import pallas as pl
from jax.experimental.pallas import tpu as pltpu

K = 3      # kernel_size
PAD = 1    # padding
STRIDE = 1
KK = K * K


# -----------------------------------------------------------------------------
# Kernel 1: fused offset-conv + modulator-conv.
# Output rows: [0:2*KK] = normalized*scaled offsets (2k -> dy, 2k+1 -> dx),
#              [2*KK:3*KK] = modulators (2*sigmoid).
# -----------------------------------------------------------------------------
def _posmod_kernel(patches_ref, wfused_ref, bfused_ref, out_ref, *, HW, max_offset):
    HWp = patches_ref.shape[-1]

    # one fused matmul for both small convs (M = 3*KK)
    fused = jnp.dot(wfused_ref[...], patches_ref[0],
                    preferred_element_type=jnp.float32) + bfused_ref[...]   # (3KK, HWp)

    off = fused[:2 * KK]                                                    # (2KK, HWp)
    sq = off * off
    if HWp != HW:   # mask padded spatial columns out of the Frobenius norm
        col = lax.broadcasted_iota(jnp.int32, (1, HWp), 1)
        sq = jnp.where(col < HW, sq, 0.0)
    norm = jnp.sqrt(jnp.sum(sq, axis=1, keepdims=True))                     # (2KK, 1)

    # exact division on an (18,1) tensor (matches torch.norm semantics;
    # with the module's literal zero-init this is 0/0 exactly like PyTorch).
    out_ref[0, :2 * KK, :] = off * (max_offset / norm)
    # sigmoid only on the 9 modulator rows (1/3 of the previous EUP work)
    out_ref[0, 2 * KK:, :] = 2.0 * jax.nn.sigmoid(fused[2 * KK:])


# -----------------------------------------------------------------------------
# Kernel 2: modulated deformable sampling + regular conv.
# grid = (B, n_q, KK): B and q-tiles "parallel", taps "arbitrary".
# Per tap: separable bilinear sampling (MXU contracts W, VPU+sublane-reduce
# contracts Hp), modulator folded into the x-hats, samples stashed into a
# (KK*C_pad, q_tile) bf16 scratch; single big matmul at the last tap.
# -----------------------------------------------------------------------------
def _sample_kernel(pm_ref, x2d_ref, wreg_ref, out_ref, col_ref, *, C_pad, Hp, W, q_tile):
    k = pl.program_id(2)
    q0 = pl.program_id(1) * q_tile

    # absolute sampling coords: learned offset + base grid + integer tap shift
    lane = lax.broadcasted_iota(jnp.int32, (1, q_tile), 1) + q0
    hq = lane // W
    wq = lane - hq * W
    ki = (k // K - PAD).astype(jnp.float32)
    kj = (k % K - PAD).astype(jnp.float32)

    p_y = pm_ref[0, pl.ds(2 * k, 1), :] + hq.astype(jnp.float32) + ki       # (1, q_tile)
    p_x = pm_ref[0, pl.ds(2 * k + 1, 1), :] + wq.astype(jnp.float32) + kj   # (1, q_tile)
    mod = pm_ref[0, pl.ds(2 * KK + k, 1), :]                                # (1, q_tile)

    # separable bilinear hat weights; modulator folded into the x-hat
    y_iota = lax.broadcasted_iota(jnp.float32, (Hp, 1), 0)
    x_iota = lax.broadcasted_iota(jnp.float32, (W, 1), 0)
    wy = jnp.maximum(0.0, 1.0 - jnp.abs(p_y - y_iota))                      # (Hp, q_tile)
    wx = jnp.maximum(0.0, 1.0 - jnp.abs(p_x - x_iota)) * mod                # (W,  q_tile)
    # TODO(synk): for very small W, batching several taps' wx columns into one
    # matmul (or a VPU 2-point combine) would raise MXU K-efficiency further.

    #   t[(c,y), q] = sum_x X[c,y,x] * wx[x,q]    -> MXU
    #   s[c, q]     = sum_y t[(c,y), q] * wy[y,q] -> VPU mult + sublane reduce
    t = jnp.dot(x2d_ref[0], wx.astype(jnp.bfloat16),
                preferred_element_type=jnp.float32)                         # (C_pad*Hp, q_tile)
    s = jnp.sum(t.reshape(C_pad, Hp, q_tile) * wy[None, :, :], axis=1)      # (C_pad, q_tile)

    row0 = pl.multiple_of(k * C_pad, C_pad)       # C_pad % 8 == 0 -> aligned stores
    col_ref[pl.ds(row0, C_pad), :] = s.astype(jnp.bfloat16)

    @pl.when(k == KK - 1)
    def _():
        out_ref[0] = jnp.dot(wreg_ref[...], col_ref[...],
                             preferred_element_type=jnp.float32)


def _vmem_limit():
    cap = 128 * 1024 * 1024
    try:
        cap = int(getattr(pltpu.get_tpu_info(), "vmem_capacity_bytes", cap))
    except Exception:
        pass
    # <=100 MiB on 128-MiB parts (v5e/v6e), ~48 MiB on v7x 64-MiB parts
    return int(min(100 * 1024 * 1024, cap * 3 // 4))


# -----------------------------------------------------------------------------
# Wrapper
# -----------------------------------------------------------------------------
def deformable_conv2d(x, w_off, b_off, w_mod, b_mod, w_reg):
    """x: (B, C_in, H, W) float32, NCHW.  Returns (B, C_out, H, W) float32."""
    B, C_in, H, W_ = x.shape
    C_out = w_reg.shape[0]
    HW = H * W_
    HWp = ((HW + 127) // 128) * 128            # lane-dense spatial axis
    Hp = ((H + 7) // 8) * 8                    # sublane-aligned H (reshape guard)
    C_pad = ((C_in + 7) // 8) * 8              # sublane-aligned channel pad
    max_offset = float((K - 1) // 2)

    q_tile = math.gcd(HWp, 1024)               # spatial tile (divides HWp, <=1024)
    n_q = HWp // q_tile
    vmem_limit = _vmem_limit()

    # ---- im2col for the two small convs: (B, KK*C_in, HWp), k-major rows ----
    # TODO(synk): im2col could be eliminated (compute the small convs from x2d
    # in-kernel via shifted views) to cut kernel-1 HBM traffic ~9x on v5e/v7x.
    xp = jnp.pad(x, ((0, 0), (0, 0), (PAD, PAD), (PAD, PAD)))
    cols = [xp[:, :, i:i + H, j:j + W_] for i in range(K) for j in range(K)]
    patches = jnp.stack(cols, axis=1).reshape(B, KK * C_in, HW)
    if HWp != HW:
        patches = jnp.pad(patches, ((0, 0), (0, 0), (0, HWp - HW)))
    patches = patches.astype(jnp.bfloat16)

    # ---- fuse offset + modulator conv weights: [18 offset rows ; 9 mod rows] ----
    def reorder(w):   # (O, C_in, K, K) -> (O, KK*C_in), column = (i*K+j)*C_in + c
        return w.transpose(0, 2, 3, 1).reshape(w.shape[0], KK * C_in)

    wfused = jnp.concatenate([reorder(w_off), reorder(w_mod)], axis=0).astype(jnp.bfloat16)
    bfused = jnp.concatenate([b_off, b_mod]).reshape(3 * KK, 1).astype(jnp.float32)

    # ---- kernel 1: normalized offsets + modulators ----
    posmod = pl.pallas_call(
        functools.partial(_posmod_kernel, HW=HW, max_offset=max_offset),
        out_shape=jax.ShapeDtypeStruct((B, 3 * KK, HWp), jnp.float32),
        grid_spec=pltpu.PrefetchScalarGridSpec(
            num_scalar_prefetch=0,
            grid=(B,),
            in_specs=[
                pl.BlockSpec((1, KK * C_in, HWp), lambda b: (b, 0, 0)),
                pl.BlockSpec((3 * KK, KK * C_in), lambda b: (0, 0)),
                pl.BlockSpec((3 * KK, 1), lambda b: (0, 0)),
            ],
            out_specs=pl.BlockSpec((1, 3 * KK, HWp), lambda b: (b, 0, 0)),
        ),
        compiler_params=pltpu.CompilerParams(
            dimension_semantics=("parallel",),
            vmem_limit_bytes=vmem_limit),
    )(patches, wfused, bfused)

    # ---- inputs for kernel 2 ----
    # x zero-padded to (C_pad, Hp): padded rows/channels contribute exactly 0,
    # matching deform_conv2d's zero padding outside the image.
    x_pad = jnp.pad(x, ((0, 0), (0, C_pad - C_in), (0, Hp - H), (0, 0)))
    x2d = x_pad.reshape(B, C_pad * Hp, W_).astype(jnp.bfloat16)

    # fused regular-conv weight: column (k*C_pad + c) <- w_reg[o, c, i, j]
    wreg_k = jnp.transpose(w_reg, (2, 3, 1, 0)).reshape(KK, C_in, C_out)
    wreg_k = jnp.pad(wreg_k, ((0, 0), (0, C_pad - C_in), (0, 0)))
    wreg_fused = wreg_k.reshape(KK * C_pad, C_out).T.astype(jnp.bfloat16)   # (C_out, KK*C_pad)

    # ---- kernel 2: deformable sampling + regular conv ----
    out = pl.pallas_call(
        functools.partial(_sample_kernel, C_pad=C_pad, Hp=Hp, W=W_, q_tile=q_tile),
        out_shape=jax.ShapeDtypeStruct((B, C_out, HWp), jnp.float32),
        grid_spec=pltpu.PrefetchScalarGridSpec(
            num_scalar_prefetch=0,
            grid=(B, n_q, KK),
            in_specs=[
                pl.BlockSpec((1, 3 * KK, q_tile), lambda b, q, k: (b, 0, q)),
                pl.BlockSpec((1, C_pad * Hp, W_), lambda b, q, k: (b, 0, 0)),
                pl.BlockSpec((C_out, KK * C_pad), lambda b, q, k: (0, 0)),
            ],
            out_specs=pl.BlockSpec((1, C_out, q_tile), lambda b, q, k: (b, 0, q)),
            scratch_shapes=[pltpu.VMEM((KK * C_pad, q_tile), jnp.bfloat16)],
        ),
        compiler_params=pltpu.CompilerParams(
            dimension_semantics=("parallel", "parallel", "arbitrary"),
            vmem_limit_bytes=vmem_limit),
    )(posmod, x2d, wreg_fused)

    return out[:, :, :HW].reshape(B, C_out, H, W_)


# ---------------- plain-JAX reference (gather-based) for validation ----------------
def _conv(x, w, b):
    y = lax.conv_general_dilated(x, w, (STRIDE, STRIDE),
                                 [(PAD, PAD), (PAD, PAD)],
                                 dimension_numbers=('NCHW', 'OIHW', 'NCHW'))
    return y + b[None, :, None, None]


def ref_deformable_conv2d(x, w_off, b_off, w_mod, b_mod, w_reg):
    B, C_in, H, W = x.shape
    C_out = w_reg.shape[0]
    max_offset = float((K - 1) // 2)

    off = _conv(x, w_off, b_off)
    norm = jnp.sqrt(jnp.sum(off * off, axis=(2, 3), keepdims=True))
    offset = off / norm * max_offset
    modulator = 2.0 * jax.nn.sigmoid(_conv(x, w_mod, b_mod))

    hs = jnp.arange(H, dtype=jnp.float32)
    ws = jnp.arange(W, dtype=jnp.float32)
    bi = jnp.arange(B)[:, None, None, None]
    ci = jnp.arange(C_in)[None, :, None, None]

    cols = []
    for i in range(K):
        for j in range(K):
            k = i * K + j
            py = hs[:, None] - PAD + i + offset[:, 2 * k]        # (B, H, W)
            px = ws[None, :] - PAD + j + offset[:, 2 * k + 1]    # (B, H, W)
            y0 = jnp.floor(py)
            x0 = jnp.floor(px)
            val = jnp.zeros((B, C_in, H, W), jnp.float32)
            for dy in (0.0, 1.0):
                for dx in (0.0, 1.0):
                    yy = y0 + dy
                    xx = x0 + dx
                    wgt = (jnp.maximum(0.0, 1.0 - jnp.abs(py - yy)) *
                           jnp.maximum(0.0, 1.0 - jnp.abs(px - xx)))
                    inb = (yy >= 0) & (yy < H) & (xx >= 0) & (xx < W)
                    yyc = jnp.clip(yy, 0, H - 1).astype(jnp.int32)
                    xxc = jnp.clip(xx, 0, W - 1).astype(jnp.int32)
                    g = x[bi, ci, yyc[:, None], xxc[:, None]]    # (B, C_in, H, W)
                    val = val + jnp.where(inb, wgt, 0.0)[:, None] * g
            cols.append(modulator[:, k:k + 1] * val)
    col = jnp.stack(cols, axis=1).reshape(B, KK * C_in, H * W)
    wreg2 = w_reg.transpose(0, 2, 3, 1).reshape(C_out, KK * C_in)
    return jnp.einsum('oc,bcp->bop', wreg2, col).reshape(B, C_out, H, W)


if __name__ == "__main__":
    B, C_in, C_out, H, W = 2, 4, 8, 16, 16

    key = jax.random.PRNGKey(0)
    kx, k1, k2, k3, k4 = jax.random.split(key, 5)
    x = jax.random.normal(kx, (B, C_in, H, W), dtype=jnp.float32)

    # Parameters (shapes from the PyTorch module __init__).
    # NOTE: the PyTorch __init__ zero-inits offset_conv weight+bias, which makes
    # the forward divide 0 by a 0 norm (NaN offsets).  We use small random
    # values instead so the synthetic forward pass is well defined.
    # TODO(synk): the literal zero-init would produce NaNs by construction (as in PyTorch).
    w_off = 0.1 * jax.random.normal(k1, (2 * KK, C_in, K, K), dtype=jnp.float32)
    b_off = 0.1 * jax.random.normal(k2, (2 * KK,), dtype=jnp.float32)
    w_mod = 0.01 * jax.random.normal(k3, (KK, C_in, K, K), dtype=jnp.float32)   # std=0.01 as in module
    b_mod = jnp.zeros((KK,), dtype=jnp.float32)                                 # zero bias as in module
    w_reg = 0.1 * jax.random.normal(k4, (C_out, C_in, K, K), dtype=jnp.float32) # regular_conv, bias=False

    out = jax.block_until_ready(
        deformable_conv2d(x, w_off, b_off, w_mod, b_mod, w_reg))
    ref = jax.block_until_ready(
        ref_deformable_conv2d(x, w_off, b_off, w_mod, b_mod, w_reg))

    assert out.shape == (B, C_out, H, W)
    assert bool(jnp.all(jnp.isfinite(out)))
    np.testing.assert_allclose(np.asarray(out), np.asarray(ref),
                               rtol=5e-2, atol=5e-2)
    print("KERNEL_OK")
</pallas_src>

<mosaic_0001>
module attributes {stable_mosaic.version = 11 : i64} {
  func.func @_posmod_kernel(%arg0: i32, %arg1: memref<1x36x256xbf16, #tpu.memory_space<vmem>>, %arg2: memref<27x36xbf16, #tpu.memory_space<vmem>>, %arg3: memref<27x1xf32, #tpu.memory_space<vmem>>, %arg4: memref<1x27x256xf32, #tpu.memory_space<vmem>>) attributes {dimension_semantics = [#tpu.dimension_semantics<parallel>], iteration_bounds = array<i64: 2>, scalar_prefetch = 0 : i64, scratch_operands = 0 : i64, tpu.core_type = #tpu.core_type<tc>, window_params = [{transform_indices = @transform_0, window_bounds = array<i64: 1, 36, 256>}, {pipeline_mode = #tpu.pipeline_mode<synchronous>, transform_indices = @transform_1, window_bounds = array<i64: 27, 36>}, {pipeline_mode = #tpu.pipeline_mode<synchronous>, transform_indices = @transform_2, window_bounds = array<i64: 27, 1>}, {transform_indices = @transform_3, window_bounds = array<i64: 1, 27, 256>}]} {
    %c0 = arith.constant 0 : index
    %c0_0 = arith.constant 0 : index
    %0 = vector.load %arg2[%c0, %c0_0] : memref<27x36xbf16, #tpu.memory_space<vmem>>, vector<27x36xbf16>
    %c0_1 = arith.constant 0 : index
    %c0_2 = arith.constant 0 : index
    %c0_3 = arith.constant 0 : index
    %1 = vector.load %arg1[%c0_1, %c0_2, %c0_3] : memref<1x36x256xbf16, #tpu.memory_space<vmem>>, vector<1x36x256xbf16>
    %2 = vector.shape_cast %1 : vector<1x36x256xbf16> to vector<36x256xbf16>
    %cst = arith.constant dense<0.000000e+00> : vector<27x256xf32>
    %3 = tpu.matmul %0, %2, %cst {dimension_numbers = #tpu.dot_dimension_numbers<[1], [0], [0], [1], [0, 0, 1, 1], [], []>} : vector<27x36xbf16>, vector<36x256xbf16>, vector<27x256xf32> -> vector<27x256xf32>
    %c0_4 = arith.constant 0 : index
    %c0_5 = arith.constant 0 : index
    %4 = vector.load %arg3[%c0_4, %c0_5] : memref<27x1xf32, #tpu.memory_space<vmem>>, vector<27x1xf32>
    %5 = vector.broadcast %4 : vector<27x1xf32> to vector<27x256xf32>
    %6 = arith.addf %3, %5 : vector<27x256xf32>
    %7 = vector.extract_strided_slice %6 {offsets = [0, 0], sizes = [18, 256], strides = [1, 1]} : vector<27x256xf32> to vector<18x256xf32>
    %8 = arith.mulf %7, %7 : vector<18x256xf32>
    %cst_6 = arith.constant dense<0.000000e+00> : vector<18xf32>
    %9 = vector.multi_reduction <add>, %8, %cst_6 [1] : vector<18x256xf32> to vector<18xf32>
    %10 = vector.shape_cast %9 : vector<18xf32> to vector<18x1xf32>
    %11 = math.sqrt %10 : vector<18x1xf32>
    %cst_7 = arith.constant 1.000000e+00 : f32
    %12 = vector.broadcast %cst_7 : f32 to vector<18x1xf32>
    %13 = arith.divf %12, %11 : vector<18x1xf32>
    %14 = vector.broadcast %13 : vector<18x1xf32> to vector<18x256xf32>
    %15 = arith.mulf %7, %14 : vector<18x256xf32>
    %c0_8 = arith.constant 0 : index
    %c0_9 = arith.constant 0 : index
    %c0_10 = arith.constant 0 : index
    %16 = vector.load %arg4[%c0_8, %c0_9, %c0_10] : memref<1x27x256xf32, #tpu.memory_space<vmem>>, vector<1x18x256xf32>
    %17 = vector.shape_cast %16 : vector<1x18x256xf32> to vector<18x256xf32>
    %18 = vector.shape_cast %15 : vector<18x256xf32> to vector<1x18x256xf32>
    tpu.vector_store %arg4[%c0_8, %c0_9, %c0_10], %18 {strides = array<i32>} : memref<1x27x256xf32, #tpu.memory_space<vmem>>, vector<1x18x256xf32>,
    %19 = vector.extract_strided_slice %6 {offsets = [18, 0], sizes = [9, 256], strides = [1, 1]} : vector<27x256xf32> to vector<9x256xf32>
    %20 = arith.negf %19 : vector<9x256xf32>
    %21 = math.exp %20 : vector<9x256xf32>
    %cst_11 = arith.constant 1.000000e+00 : f32
    %22 = vector.broadcast %cst_11 : f32 to vector<9x256xf32>
    %23 = arith.addf %22, %21 : vector<9x256xf32>
    %24 = arith.divf %22, %23 : vector<9x256xf32>
    %cst_12 = arith.constant 2.000000e+00 : f32
    %25 = vector.broadcast %cst_12 : f32 to vector<9x256xf32>
    %26 = arith.mulf %25, %24 : vector<9x256xf32>
    %c0_13 = arith.constant 0 : index
    %c18 = arith.constant 18 : index
    %c0_14 = arith.constant 0 : index
    %27 = vector.load %arg4[%c0_13, %c18, %c0_14] : memref<1x27x256xf32, #tpu.memory_space<vmem>>, vector<1x9x256xf32>
    %28 = vector.shape_cast %27 : vector<1x9x256xf32> to vector<9x256xf32>
    %29 = vector.shape_cast %26 : vector<9x256xf32> to vector<1x9x256xf32>
    tpu.vector_store %arg4[%c0_13, %c18, %c0_14], %29 {strides = array<i32>} : memref<1x27x256xf32, #tpu.memory_space<vmem>>, vector<1x9x256xf32>,
    return
  }
  func.func @transform_0(%arg0: i32) -> (i32, i32, i32) {
    %c0_i32 = arith.constant 0 : i32
    %c0_i32_0 = arith.constant 0 : i32
    %c0_i32_1 = arith.constant 0 : i32
    return %arg0, %c0_i32, %c0_i32_0 : i32, i32, i32
  }
  func.func @transform_1(%arg0: i32) -> (i32, i32) {
    %c0_i32 = arith.constant 0 : i32
    %c0_i32_0 = arith.constant 0 : i32
    %c0_i32_1 = arith.constant 0 : i32
    return %c0_i32, %c0_i32_0 : i32, i32
  }
  func.func @transform_2(%arg0: i32) -> (i32, i32) {
    %c0_i32 = arith.constant 0 : i32
    %c0_i32_0 = arith.constant 0 : i32
    %c0_i32_1 = arith.constant 0 : i32
    return %c0_i32, %c0_i32_0 : i32, i32
  }
  func.func @transform_3(%arg0: i32) -> (i32, i32, i32) {
    %c0_i32 = arith.constant 0 : i32
    %c0_i32_0 = arith.constant 0 : i32
    %c0_i32_1 = arith.constant 0 : i32
    return %arg0, %c0_i32, %c0_i32_0 : i32, i32, i32
  }
}

</mosaic_0001>

<bundles_post_ra>
// kernel: tpu_custom_call.1
= control target key start
LH: loop header
LB: loop body
LE: loop exit
PB: predicated region body
PF: predicated region fallthrough
CT: control target
= control target key end

     0   :  { %s665_s12 = smov 0   ;;  %s755_s0 = inlined_call_operand.vmem [shape: bf16[2,36,256], index: 0, kind: input, shape index: {}]   ;;  %s756_s1 = inlined_call_operand.vmem [shape: bf16[27,36], index: 1, kind: input, shape index: {}]   ;;  %s757_s2 = inlined_call_operand.vmem [shape: f32[27,1], index: 2, kind: input, shape index: {}]   ;;  %s758_s3 = inlined_call_operand.vmem [shape: f32[2,27,256], index: 3, kind: output, shape index: {}]  }
   0x1 LB: > { %s541_s13 = sadd.s32 4294967295, %s642_s12   ;;  %p545_p0 = scmp.ge.s32.totalorder %s642_s12, 1  ;;  %s642_s12 = sphi %s665_s12, %s13_s12  }
   0x2   : > { %p137_p1 = scmp.lt.s32.totalorder %s642_s12, 3 }
   0x4   : > { %p138_p2 = pnand %p545_p0, %p137_p1 }
   0x5   : > { %p161_p3 = scmp.lt.s32.totalorder (!%p138_p2), %s541_s13, 1 }
   0x6   : > { %141 = sbr.rel (%p138_p2) target bundleno = 339 (0x153), region = 32 }
   0xb   : > { %v183_v0 = vld [vmem:[%s757_s2 + $0x10] sm:$0xff]  ;;  %s760_s13 = smov (!%p161_p3, %s541_s13), 1  ;;  %v644_v1 = vmov 0   ;;  %v182_v2 = vld [vmem:[%s757_s2 + $0x8] sm:$0xff]  ;;  %v181_v6 = vld [vmem:[%s757_s2] sm:$0xff]  ;;  %vm247_vm0 = vcmask 1041408  }
   0xc   : > { %606 = vset.pattern.permute.xlu0 %v644_v1  ;;  %607 = vset.pattern.permute.xlu1 %v644_v1  ;;  %s596_s18 = smul.u32 40, %s760_s13  ;;  %v184_v21 = vld [vmem:[%s757_s2 + $0x18] sm:$0x7]  ;;  %v555_v23 = vld [vmem:[%s756_s1 + $0x8] sm:$0xf]  ;;  %v584_v26 = vld [vmem:[%s756_s1] sm:$0xff] }
   0xd   : > { %197 = vperm.xlu0 %606, %v183_v0   ;;  %192 = vperm.xlu1 %607, %v182_v2   ;;  %v585_v24 = vld [vmem:[%s756_s1 + $0x8] sm:$0x30]  ;;  %vm240_vm1 = vcmask 293888   ;;  %s583_s5 = sshll.u32 %s760_s13, 6 }
   0xe   : > { %s165_s21 = scalar_lea.vmem %s755_s0, %s596_s18  ;;  %v556_v27 = vor.u32 %v585_v24, %v555_v23  ;;  %s734_s8 = scalar_lea.vmem %s758_s3, %s583_s5 }
   0xf   : > { %v180_v3 = vld [vmem:[%s165_s21 + $0x20] sm:$0x33]  ;;  %v567_v9 = vld [vmem:[%s165_s21 + $0x10] sm:$0xf]  ;;  %v589_v10 = vld [vmem:[%s165_s21 + $0x14] sm:$0xf0] }
  0x10   : > { %v228_v4 = vunpack.c.l.b16 %v180_v3  ;;  %v229_v5 = vunpack.c.h.b16 %v180_v3  ;;  %v588_v11 = vld [vmem:[%s165_s21 + $0x14] sm:$0xf]  ;;  %v569_v12 = vld [vmem:[%s165_s21 + $0x18] sm:$0xf0]  ;;  %v568_v15 = vor.u32 %v589_v10, %v567_v9  ;;  %v559_v17 = vld [vmem:[%s165_s21] sm:$0xf] }
  0x11   : > { %v572_v16 = vor.u32 %v588_v11, %v569_v12  ;;  %v587_v18 = vld [vmem:[%s165_s21 + $0x4] sm:$0xf0]  ;;  %v586_v19 = vld [vmem:[%s165_s21 + $0x4] sm:$0xf]  ;;  %v561_v20 = vld [vmem:[%s165_s21 + $0x8] sm:$0xf0] }
  0x12   : > { %v234_v7 = vpack.c.b16 %v228_v4, %v228_v4  ;;  %v235_v8 = vpack.c.b16 %v229_v5, %v229_v5  ;;  %v560_v22 = vor.u32 %v587_v18, %v559_v17  ;;  %v564_v25 = vor.u32 %v586_v19, %v561_v20 }
  0x14   : > { %v249_v13 = vsel %vm247_vm0, %v234_v7, 0  ;;  %v252_v14 = vsel %vm247_vm0, %v235_v8, 0 }
  0x15   : > { %187 = vperm.xlu0 %606, %v181_v6   ;;  %259 = vmatpush.bf16.msra.mxu0 %v249_v13 }
  0x16   : > { %590 = vmatpush.bf16.msra.mxu2 %v249_v13  ;;  %278 = vmatpush.bf16.msra.mxu1 %v252_v14 }
  0x17   : > { %593 = vmatpush.bf16.msra.mxu3 %v252_v14 }
  0x19   : > { %260 = vmatpush.bf16.msra.mxu0 %v568_v15 }
  0x1a   : > { %591 = vmatpush.bf16.msra.mxu2 %v568_v15  ;;  %279 = vmatpush.bf16.msra.mxu1 %v572_v16 }
  0x1b   : > { %594 = vmatpush.bf16.msra.mxu3 %v572_v16 }
  0x1d   : > { %202 = vperm.xlu0 %606, %v184_v21   ;;  %261 = vmatpush.bf16.msra.mxu0 %v560_v22 }
  0x1e   : > { %592 = vmatpush.bf16.msra.mxu2 %v560_v22  ;;  %280 = vmatpush.bf16.msra.mxu1 %v564_v25 }
  0x1f   : > { %595 = vmatpush.bf16.msra.mxu3 %v564_v25 }
  0x20   : > { %573 = vmatmul.msk.bf16.vlgmr.msra.gmra.mxu0 %vm240_vm1, %v584_v26 }
  0x21   : > { %574 = vmatmul.msk.bf16.vlgmr.msra.gmra.mxu2 %vm240_vm1, %v556_v27  ;;  %575 = vmatmul.msk.bf16.vlgmr.msra.gmra.mxu1 %vm240_vm1, %v584_v26 }
  0x22   : > { %576 = vmatmul.msk.bf16.vlgmr.msra.gmra.mxu3 %vm240_vm1, %v556_v27 }
  0x7f   : > { %v198_v28 = vpop.permute.xlu0 %197  ;;  %v193_v38 = vpop.permute.xlu1 %192 }
  0x87   : > { %v188_v29 = vpop.permute.xlu0 %187 }
  0x8f   : > { %v203_v50 = vpop.permute.xlu0 %202 }
  0x9d   : > { %v263_v30 = vpop.f32.mrf.mxu0 }
  0x9e   : > { %v702_v31 = vadd.f32 %v263_v30, %v188_v29  ;;  %v282_v32 = vpop.f32.mrf.mxu1 }
  0x9f   : > { %v704_v33 = vadd.f32 %v282_v32, %v188_v29 }
  0xa0   : > { %v292_v34 = vmul.f32 %v702_v31, %v702_v31 }
  0xa1   : > { %v293_v35 = vmul.f32 %v704_v33, %v704_v33 }
  0xa3   : > { %v298_v37 = vadd.f32 %v293_v35, %v292_v34 }
  0xa4   : > { %v268_v36 = vpop.f32.mrf.mxu2 }
  0xa5   : > { %v710_v39 = vadd.f32 %v268_v36, %v198_v28  ;;  %v287_v40 = vpop.f32.mrf.mxu3  ;;  %299 = vadd.xlane.f32.xlu1 %v298_v37  ;;  %v265_v42 = vpop.f32.mrf.mxu0 }
  0xa6   : > { %v712_v41 = vadd.f32 %v287_v40, %v198_v28  ;;  %v715_v44 = vadd.f32 %v265_v42, %v193_v38  ;;  %v284_v45 = vpop.f32.mrf.mxu1 }
  0xa7   : > { %v577_v43 = vmul.f32 -1.442695, %v710_v39  ;;  %v718_v47 = vadd.f32 %v284_v45, %v193_v38  ;;  %v296_v55 = vmul.f32 %v710_v39, %v710_v39 }
  0xa8   : > { %v578_v46 = vmul.f32 -1.442695, %v712_v41  ;;  %v294_v48 = vmul.f32 %v715_v44, %v715_v44  ;;  %v297_v56 = vmul.f32 %v712_v41, %v712_v41 }
  0xa9   : > { %608 = vpow2.f32 %v577_v43  ;;  %v295_v49 = vmul.f32 %v718_v47, %v718_v47  ;;  %v304_v0 = vsel %vm247_vm0, %v296_v55, 0.0 }
  0xaa   : > { %610 = vpow2.f32 %v578_v46  ;;  %v305_v1 = vsel %vm247_vm0, %v297_v56, 0.0 }
  0xab   : > { %v301_v52 = vadd.f32 %v295_v49, %v294_v48  ;;  %v306_v2 = vadd.f32 %v305_v1, %v304_v0 }
  0xac   : > { %v270_v51 = vpop.f32.mrf.mxu2 }
  0xad   : > { %v271_v53 = vadd.f32 %v270_v51, %v203_v50  ;;  %v289_v54 = vpop.f32.mrf.mxu3  ;;  %302 = vadd.xlane.f32.xlu2 %v301_v52 }
  0xae   : > { %v290_v57 = vadd.f32 %v289_v54, %v203_v50 }
  0xaf   : > { %v609_v58 = vpop.eup %608  ;;  %v579_v59 = vmul.f32 -1.442695, %v271_v53 }
  0xb0   : > { %v611_v60 = vpop.eup %610  ;;  %v414_v61 = vadd.f32 1.0, %v609_v58  ;;  %v580_v62 = vmul.f32 -1.442695, %v290_v57 }
  0xb1   : > { %v415_v63 = vadd.f32 1.0, %v611_v60  ;;  %612 = vpow2.f32 %v579_v59 }
  0xb2   : > { %614 = vrcp.f32 %v414_v61  ;;  %v427_v12 = vand.u32 2147483647, %v414_v61  ;;  %v429_v13 = vand.u32 2147483648, %v414_v61  ;;  %vm423_vm4 = vweird.f32 %v414_v61 }
  0xb3   : > { %616 = vrcp.f32 %v415_v63  ;;  %v444_v16 = vand.u32 2147483648, %v415_v63  ;;  %v442_v18 = vand.u32 2147483647, %v415_v63  ;;  %vm438_vm6 = vweird.f32 %v415_v63 }
  0xb4   : > { %618 = vpow2.f32 %v580_v62  ;;  %v430_v21 = vor.u32 1.1754944e-38, %v429_v13  ;;  %vm428_vm7 = vcmp.eq.f32.partialorder %v427_v12, 8.507059e+37 }
  0xb5   : > { %307 = vadd.xlane.f32.xlu2 %v306_v2  ;;  %v445_v24 = vor.u32 1.1754944e-38, %v444_v16  ;;  %vm443_vm9 = vcmp.eq.f32.partialorder %v442_v18, 8.507059e+37 }
  0xb7   : > { %v613_v3 = vpop.eup %612 }
  0xb8   : > { %v615_v4 = vpop.eup %614  ;;  %v416_v5 = vadd.f32 1.0, %v613_v3 }
  0xb9   : > { %v617_v6 = vpop.eup %616  ;;  %v419_v7 = vmul.f32 %v615_v4, %v414_v61  ;;  %vm424_vm2 = vweird.f32 %v615_v4 }
  0xba   : > { %v619_v8 = vpop.eup %618  ;;  %v434_v9 = vmul.f32 %v617_v6, %v415_v63  ;;  %620 = vrcp.f32 %v416_v5  ;;  %vm439_vm3 = vweird.f32 %v617_v6  ;;  %vm425_vm5 = vmor %vm423_vm4, %vm424_vm2  ;;  %v459_v35 = vand.u32 2147483648, %v416_v5 }
  0xbb   : > { %v420_v10 = vsub.f32 1.0, %v419_v7  ;;  %v417_v11 = vadd.f32 1.0, %v619_v8  ;;  %vm440_vm8 = vmor %vm438_vm6, %vm439_vm3  ;;  %v457_v38 = vand.u32 2147483647, %v416_v5  ;;  %vm453_vm11 = vweird.f32 %v416_v5 }
  0xbc   : > { %v435_v14 = vsub.f32 1.0, %v434_v9  ;;  %v460_v45 = vor.u32 1.1754944e-38, %v459_v35 }
  0xbd   : > { %v421_v15 = vmul.f32 %v615_v4, %v420_v10  ;;  %622 = vrcp.f32 %v417_v11  ;;  %v474_v43 = vand.u32 2147483648, %v417_v11  ;;  %v472_v48 = vand.u32 2147483647, %v417_v11 }
  0xbe   : > { %v436_v17 = vmul.f32 %v617_v6, %v435_v14  ;;  %vm458_vm14 = vcmp.eq.f32.partialorder %v457_v38, 8.507059e+37  ;;  %vm468_vm15 = vweird.f32 %v417_v11 }
  0xbf   : > { %v422_v19 = vadd.f32 %v615_v4, %v421_v15  ;;  %v475_v53 = vor.u32 1.1754944e-38, %v474_v43  ;;  %vm473_vm1 = vcmp.eq.f32.partialorder %v472_v48, 8.507059e+37 }
  0xc0   : > { %v621_v20 = vpop.eup %620  ;;  %v437_v22 = vadd.f32 %v617_v6, %v436_v17 }
  0xc1   : > { %v426_v23 = vsel %vm425_vm5, %v615_v4, %v422_v19  ;;  %v449_v25 = vmul.f32 %v621_v20, %v416_v5  ;;  %vm454_vm10 = vweird.f32 %v621_v20 }
  0xc2   : > { %v431_v26 = vsel %vm428_vm7, %v430_v21, %v426_v23  ;;  %v441_v27 = vsel %vm440_vm8, %v617_v6, %v437_v22  ;;  %vm455_vm12 = vmor %vm453_vm11, %vm454_vm10 }
  0xc3   : > { %v623_v28 = vpop.eup %622  ;;  %v478_v29 = vmul.f32 2.0, %v431_v26  ;;  %v446_v30 = vsel %vm443_vm9, %v445_v24, %v441_v27  ;;  %v450_v32 = vsub.f32 1.0, %v449_v25 }
  0xc4   : > { %v479_v34 = vmul.f32 2.0, %v446_v30  ;;  %v464_v36 = vmul.f32 %v623_v28, %v417_v11  ;;  %vm469_vm13 = vweird.f32 %v623_v28 }
  0xc5   : > { %482 = vst [vmem:[%s734_s8 + $0x20] sm:$0xfc] %v478_v29  ;;  %v451_v37 = vmul.f32 %v621_v20, %v450_v32  ;;  %vm470_vm0 = vmor %vm468_vm15, %vm469_vm13 }
  0xc6   : > { %483 = vst [vmem:[%s734_s8 + $0x28] sm:$0xfc] %v479_v34  ;;  %v465_v40 = vsub.f32 1.0, %v464_v36 }
  0xc7   : > { %v452_v42 = vadd.f32 %v621_v20, %v451_v37 }
  0xc8   : > { %v466_v46 = vmul.f32 %v623_v28, %v465_v40 }
  0xc9   : > { %v456_v49 = vsel %vm455_vm12, %v621_v20, %v452_v42 }
  0xca   : > { %v461_v50 = vsel %vm458_vm14, %v460_v45, %v456_v49  ;;  %v467_v51 = vadd.f32 %v623_v28, %v466_v46 }
  0xcb   : > { %v480_v52 = vmul.f32 2.0, %v461_v50 }
  0xcc   : > { %v471_v54 = vsel %vm470_vm0, %v623_v28, %v467_v51 }
  0xcd   : > { %484 = vst [vmem:[%s734_s8 + $0x30] sm:$0x7] %v480_v52  ;;  %v476_v55 = vsel %vm473_vm1, %v475_v53, %v471_v54 }
  0xce   : > { %v481_v56 = vmul.f32 2.0, %v476_v55 }
  0xd0   : > { %485 = vst [vmem:[%s734_s8 + $0x38] sm:$0x7] %v481_v56 }
 0x118   : > { %v300_v57 = vpop.xlane.xlu1 %299 }
 0x119   : > { %624 = vrsqrt.f32 %v300_v57  ;;  %vm316_vm2 = vcmp.eq.f32.partialorder %v300_v57, inf  ;;  %v319_v6 = vand.u32 2147483648, %v300_v57  ;;  %vm318_vm3 = vcmp.eq.f32.partialorder %v300_v57, 0.0 }
 0x11f   : > { %v625_v58 = vpop.eup %624 }
 0x120   : > { %v310_v59 = vmul.f32 %v625_v58, %v300_v57  ;;  %v303_v60 = vpop.xlane.xlu2 %302 }
 0x121   : > { %626 = vrsqrt.f32 %v303_v60  ;;  %vm328_vm4 = vcmp.eq.f32.partialorder %v303_v60, inf  ;;  %v331_v17 = vand.u32 2147483648, %v303_v60  ;;  %vm330_vm5 = vcmp.eq.f32.partialorder %v303_v60, 0.0 }
 0x122   : > { %v311_v61 = vmul.f32 %v625_v58, %v310_v59 }
 0x124   : > { %v312_v62 = vmul.f32 0.5, %v311_v61 }
 0x126   : > { %v313_v63 = vsub.f32 1.5, %v312_v62 }
 0x127   : > { %v627_v0 = vpop.eup %626 }
 0x128   : > { %v314_v1 = vmul.f32 %v625_v58, %v313_v63  ;;  %v322_v2 = vmul.f32 %v627_v0, %v303_v60  ;;  %v308_v3 = vpop.xlane.xlu2 %307 }
 0x129   : > { %628 = vrsqrt.f32 %v308_v3  ;;  %vm340_vm8 = vcmp.eq.f32.partialorder %v308_v3, inf  ;;  %v343_v30 = vand.u32 2147483648, %v308_v3  ;;  %vm342_vm10 = vcmp.eq.f32.partialorder %v308_v3, 0.0 }
 0x12a   : > { %v315_v4 = vmul.f32 %v314_v1, %v300_v57  ;;  %v323_v5 = vmul.f32 %v627_v0, %v322_v2 }
 0x12c   : > { %v317_v7 = vsel %vm316_vm2, %v300_v57, %v315_v4  ;;  %v324_v8 = vmul.f32 0.5, %v323_v5 }
 0x12d   : > { %v320_v9 = vsel %vm318_vm3, %v319_v6, %v317_v7 }
 0x12e   : > { %630 = vrcp.f32 %v320_v9  ;;  %v325_v11 = vsub.f32 1.5, %v324_v8  ;;  %v356_v24 = vand.u32 2147483648, %v320_v9  ;;  %v354_v27 = vand.u32 2147483647, %v320_v9 }
 0x12f   : > { %v629_v10 = vpop.eup %628  ;;  %vm350_vm7 = vweird.f32 %v320_v9 }
 0x130   : > { %v334_v12 = vmul.f32 %v629_v10, %v308_v3  ;;  %v326_v13 = vmul.f32 %v627_v0, %v325_v11  ;;  %v357_v32 = vor.u32 1.1754944e-38, %v356_v24  ;;  %vm355_vm11 = vcmp.eq.f32.partialorder %v354_v27, 8.507059e+37 }
 0x132   : > { %v335_v14 = vmul.f32 %v629_v10, %v334_v12  ;;  %v327_v15 = vmul.f32 %v326_v13, %v303_v60 }
 0x134   : > { %v631_v16 = vpop.eup %630  ;;  %v336_v18 = vmul.f32 0.5, %v335_v14  ;;  %v329_v20 = vsel %vm328_vm4, %v303_v60, %v327_v15 }
 0x135   : > { %v346_v19 = vmul.f32 %v631_v16, %v320_v9  ;;  %v332_v21 = vsel %vm330_vm5, %v331_v17, %v329_v20  ;;  %vm351_vm6 = vweird.f32 %v631_v16 }
 0x136   : > { %v337_v22 = vsub.f32 1.5, %v336_v18  ;;  %632 = vrcp.f32 %v332_v21  ;;  %vm352_vm9 = vmor %vm350_vm7, %vm351_vm6  ;;  %v371_v46 = vand.u32 2147483648, %v332_v21  ;;  %v369_v49 = vand.u32 2147483647, %v332_v21 }
 0x137   : > { %v347_v23 = vsub.f32 1.0, %v346_v19  ;;  %vm365_vm13 = vweird.f32 %v332_v21 }
 0x138   : > { %v338_v25 = vmul.f32 %v629_v10, %v337_v22  ;;  %v372_v52 = vor.u32 1.1754944e-38, %v371_v46  ;;  %vm370_vm15 = vcmp.eq.f32.partialorder %v369_v49, 8.507059e+37 }
 0x139   : > { %v348_v26 = vmul.f32 %v631_v16, %v347_v23 }
 0x13a   : > { %v339_v28 = vmul.f32 %v338_v25, %v308_v3 }
 0x13b   : > { %v349_v29 = vadd.f32 %v631_v16, %v348_v26 }
 0x13c   : > { %v341_v34 = vsel %vm340_vm8, %v308_v3, %v339_v28  ;;  %v633_v35 = vpop.eup %632 }
 0x13d   : > { %v353_v36 = vsel %vm352_vm9, %v631_v16, %v349_v29  ;;  %v344_v37 = vsel %vm342_vm10, %v343_v30, %v341_v34  ;;  %v361_v40 = vmul.f32 %v633_v35, %v332_v21  ;;  %vm366_vm12 = vweird.f32 %v633_v35 }
 0x13e   : > { %v358_v38 = vsel %vm355_vm11, %v357_v32, %v353_v36  ;;  %634 = vrcp.f32 %v344_v37  ;;  %vm367_vm14 = vmor %vm365_vm13, %vm366_vm12  ;;  %v386_v57 = vand.u32 2147483648, %v344_v37  ;;  %v384_v59 = vand.u32 2147483647, %v344_v37 }
 0x13f   : > { %v390_v42 = vmul.f32 %v358_v38, %v702_v31  ;;  %v391_v43 = vmul.f32 %v358_v38, %v704_v33  ;;  %v362_v45 = vsub.f32 1.0, %v361_v40  ;;  %vm380_vm1 = vweird.f32 %v344_v37 }
 0x140   : > { %v387_v61 = vor.u32 1.1754944e-38, %v386_v57  ;;  %vm385_vm3 = vcmp.eq.f32.partialorder %v384_v59, 8.507059e+37 }
 0x141   : > { %396 = vst [vmem:[%s734_s8] sm:$0xff] %v390_v42  ;;  %v363_v48 = vmul.f32 %v633_v35, %v362_v45 }
 0x142   : > { %397 = vst [vmem:[%s734_s8 + $0x8] sm:$0xff] %v391_v43 }
 0x143   : > { %v364_v51 = vadd.f32 %v633_v35, %v363_v48 }
 0x144   : > { %v635_v50 = vpop.eup %634 }
 0x145   : > { %v376_v53 = vmul.f32 %v635_v50, %v344_v37  ;;  %v368_v54 = vsel %vm367_vm14, %v633_v35, %v364_v51  ;;  %vm381_vm0 = vweird.f32 %v635_v50 }
 0x146   : > { %v373_v31 = vsel %vm370_vm15, %v372_v52, %v368_v54  ;;  %vm382_vm2 = vmor %vm380_vm1, %vm381_vm0 }
 0x147   : > { %v377_v55 = vsub.f32 1.0, %v376_v53  ;;  %v392_v33 = vmul.f32 %v373_v31, %v715_v44  ;;  %v393_v56 = vmul.f32 %v373_v31, %v718_v47 }
 0x149   : > { %v378_v58 = vmul.f32 %v635_v50, %v377_v55  ;;  %398 = vst [vmem:[%s734_s8 + $0x10] sm:$0xff] %v392_v33 }
 0x14a   : > { %399 = vst [vmem:[%s734_s8 + $0x18] sm:$0xff] %v393_v56 }
 0x14b   : > { %v379_v60 = vadd.f32 %v635_v50, %v378_v58 }
 0x14d   : > { %v383_v62 = vsel %vm382_vm2, %v635_v50, %v379_v60 }
 0x14e   : > { %v388_v63 = vsel %vm385_vm3, %v387_v61, %v383_v62 }
 0x14f   : > { %v394_v0 = vmul.f32 %v388_v63, %v710_v39  ;;  %v395_v44 = vmul.f32 %v388_v63, %v712_v41 }
 0x151   : > { %400 = vst [vmem:[%s734_s8 + $0x20] sm:$0x3] %v394_v0 }
 0x152   : > { %401 = vst [vmem:[%s734_s8 + $0x28] sm:$0x3] %v395_v44 }
 0x153 PF: > { %s13_s12 = sadd.s32 1, %s642_s12  }
 0x154   : > { %p10_p4 = scmp.ge.s32.totalorder %s13_s12, 4  }
 0x156   :  { %12 = sbr.rel (!%p10_p4) target bundleno = 1 (0x1), region = 62 }

</bundles_post_ra>
